<compile_context>
chip_gen: v7x
topology: tpu7x:2x2x1
jax: 0.10.0
libtpu: 0.0.40
codegen_flags: <defaults>
</compile_context>

<pallas_src>
import functools
import math

import jax
import jax.numpy as jnp
from jax import lax
from jax.experimental import pallas as pl
from jax.experimental.pallas import tpu as pltpu


def _round_up(x, m):
    return ((x + m - 1) // m) * m


def _pad_to(a, shape):
    if tuple(a.shape) == tuple(shape):
        return a
    return jnp.pad(a, [(0, t - s) for s, t in zip(a.shape, shape)])


# Contract last dim of x (tm, tk) with last dim of w (tn, tk) -> (tm, tn).
_CONTRACT_LAST = (((1,), (1,)), ((), ()))


def _make_kernel(has_bias, multi_k, use_scratch, compute_dtype):
    def kernel(*refs):
        if use_scratch:
            acc_ref = refs[-1]
            refs = refs[:-1]
        if has_bias:
            x_ref, w_ref, b_ref, o_ref = refs
        else:
            x_ref, w_ref, o_ref = refs
            b_ref = None
        if not use_scratch:
            acc_ref = o_ref  # f32 output block stays resident across k

        x = x_ref[...]
        w = w_ref[...]
        if compute_dtype is not None:
            x = x.astype(compute_dtype)
            w = w.astype(compute_dtype)
        part = lax.dot_general(x, w, dimension_numbers=_CONTRACT_LAST,
                               preferred_element_type=jnp.float32)

        def finalize(acc):
            out = acc
            if has_bias:
                out = out + b_ref[...].astype(jnp.float32)  # (1, tn) broadcast
            o_ref[...] = out.astype(o_ref.dtype)

        if not multi_k:
            # Single K step: no accumulator, no branches.
            finalize(part)
            return

        k = pl.program_id(2)

        @pl.when(k == 0)
        def _():
            acc_ref[...] = jnp.zeros_like(acc_ref)

        acc_ref[...] += part

        @pl.when(k == pl.num_programs(2) - 1)
        def _():
            finalize(acc_ref[...])

    return kernel


@functools.partial(jax.jit, static_argnames=("tm", "tn", "tk", "compute_dtype"))
def sparse_linear(x, weight, bias=None, *, tm=256, tn=256, tk=1024,
                  compute_dtype=None):
    """Pallas implementation of SparseLinear.forward.

    x      : (M, in_features)
    weight : (out_features, in_features)   (PyTorch layout, used as-is)
    bias   : (out_features,) or None
    returns: (M, out_features)
    """
    M, K = x.shape
    N, K_w = weight.shape
    assert K == K_w, "in_features mismatch between input and weight"

    out_dtype = x.dtype
    has_bias = bias is not None

    # Clamp tiles to the rounded-up problem dims: no padding of small problems
    # up to full tile size, while keeping the (8, 128) block constraint.
    tm = min(tm, _round_up(M, 8))
    tn = min(tn, _round_up(N, 128))
    tk = min(tk, _round_up(K, 128))

    Mp, Np, Kp = _round_up(M, tm), _round_up(N, tn), _round_up(K, tk)

    # Megacore (v7x has 2 TCs): if both parallel axes collapsed to one block,
    # halve the M tile so there are >= 2 parallel blocks.
    if Mp // tm == 1 and Np // tn == 1 and Mp >= 16:
        tm = _round_up(pl.cdiv(Mp, 2), 8)
        Mp = _round_up(M, tm)

    num_k = Kp // tk
    multi_k = num_k > 1
    # Scratch accumulator only needed when the output dtype can't hold the
    # running f32 sum across K steps.
    use_scratch = multi_k and (jnp.dtype(out_dtype) != jnp.dtype(jnp.float32))

    # Pad (skipped when already aligned).
    x_p = _pad_to(x, (Mp, Kp))
    w_p = _pad_to(weight, (Np, Kp))

    if multi_k:
        x_spec = pl.BlockSpec((tm, tk), lambda i, j, k: (i, k))
        w_spec = pl.BlockSpec((tn, tk), lambda i, j, k: (j, k))
        b_spec = pl.BlockSpec((1, tn), lambda i, j, k: (0, j))
        o_spec = pl.BlockSpec((tm, tn), lambda i, j, k: (i, j))
        grid = (Mp // tm, Np // tn, num_k)
        dims = ("parallel", "parallel", "arbitrary")
    else:
        x_spec = pl.BlockSpec((tm, tk), lambda i, j: (i, 0))
        w_spec = pl.BlockSpec((tn, tk), lambda i, j: (j, 0))
        b_spec = pl.BlockSpec((1, tn), lambda i, j: (0, j))
        o_spec = pl.BlockSpec((tm, tn), lambda i, j: (i, j))
        grid = (Mp // tm, Np // tn)
        dims = ("parallel", "parallel")

    in_specs = [x_spec, w_spec]
    args = [x_p, w_p]
    if has_bias:
        b_p = _pad_to(bias.reshape(1, N), (1, Np))
        in_specs.append(b_spec)
        args.append(b_p)

    scratch = [pltpu.VMEM((tm, tn), jnp.float32)] if use_scratch else []

    # VMEM budget: double-buffered inputs + output buffers (+ scratch), with
    # headroom, capped at 64 MiB so the limit is valid on v7x too.
    itemsize = jnp.dtype(x.dtype).itemsize
    out_itemsize = jnp.dtype(out_dtype).itemsize
    vmem_need = 2 * (tm * tk + tn * tk) * itemsize
    vmem_need += 2 * tm * tn * out_itemsize
    if has_bias:
        vmem_need += 2 * tn * jnp.dtype(bias.dtype).itemsize
    if use_scratch:
        vmem_need += tm * tn * 4
    vmem_limit = int(min(max(2 * vmem_need, 32 * 1024 * 1024), 64 * 1024 * 1024))

    cost = pl.CostEstimate(
        flops=2 * Mp * Np * Kp,
        transcendentals=0,
        bytes_accessed=(Mp * Kp + Np * Kp) * itemsize + Mp * Np * out_itemsize,
    )

    out_p = pl.pallas_call(
        _make_kernel(has_bias, multi_k, use_scratch, compute_dtype),
        out_shape=jax.ShapeDtypeStruct((Mp, Np), out_dtype),
        grid_spec=pltpu.PrefetchScalarGridSpec(
            num_scalar_prefetch=0,
            grid=grid,
            in_specs=in_specs,
            out_specs=o_spec,
            scratch_shapes=scratch,
        ),
        compiler_params=pltpu.CompilerParams(
            dimension_semantics=dims,
            vmem_limit_bytes=vmem_limit),
        cost_estimate=cost,
    )(*args)

    if (Mp, Np) != (M, N):
        out_p = out_p[:M, :N]
    return out_p


def _reference(x, weight, bias=None):
    out = x @ weight.T
    if bias is not None:
        out = out + bias
    return out


if __name__ == "__main__":
    # SparseLinear(in_features=512, out_features=256) on a batch of 256 rows.
    M, in_features, out_features = 256, 512, 256

    key = jax.random.PRNGKey(0)
    kx, kw, kb = jax.random.split(key, 3)

    x = jax.random.normal(kx, (M, in_features), dtype=jnp.float32)

    # reset_parameters(): kaiming_uniform(a=sqrt(5)) -> U(-1/sqrt(fan_in), 1/sqrt(fan_in)),
    # bias ~ U(-1/sqrt(fan_in), 1/sqrt(fan_in)).
    bound = 1.0 / math.sqrt(in_features)
    weight = jax.random.uniform(kw, (out_features, in_features),
                                minval=-bound, maxval=bound, dtype=jnp.float32)
    bias = jax.random.uniform(kb, (out_features,),
                              minval=-bound, maxval=bound, dtype=jnp.float32)

    # With bias (module default).  Single-K-step path, 2x1 parallel grid.
    out = jax.block_until_ready(sparse_linear(x, weight, bias))
    ref = _reference(x, weight, bias)
    assert out.shape == (M, out_features)
    assert jnp.allclose(out, ref, atol=2e-3, rtol=2e-3), "mismatch vs reference (bias)"

    # Without bias (bias input + its DMA dropped entirely).
    out_nb = jax.block_until_ready(sparse_linear(x, weight, None))
    ref_nb = _reference(x, weight, None)
    assert jnp.allclose(out_nb, ref_nb, atol=2e-3, rtol=2e-3), "mismatch vs reference (no bias)"

    # Non-tile-aligned shapes exercise clamped tiles + padding path.
    x2 = jax.random.normal(kx, (100, 200), dtype=jnp.float32)
    w2 = jax.random.uniform(kw, (72, 200), minval=-0.07, maxval=0.07, dtype=jnp.float32)
    b2 = jax.random.uniform(kb, (72,), minval=-0.07, maxval=0.07, dtype=jnp.float32)
    out2 = jax.block_until_ready(sparse_linear(x2, w2, b2))
    ref2 = _reference(x2, w2, b2)
    assert out2.shape == (100, 72)
    assert jnp.allclose(out2, ref2, atol=2e-3, rtol=2e-3), "mismatch vs reference (padded)"

    # Multi-K-step path (K reduction axis, accumulate directly in f32 output block).
    x3 = jax.random.normal(kx, (192, 2048), dtype=jnp.float32)
    w3 = jax.random.uniform(kw, (320, 2048), minval=-0.02, maxval=0.02, dtype=jnp.float32)
    b3 = jax.random.uniform(kb, (320,), minval=-0.02, maxval=0.02, dtype=jnp.float32)
    out3 = jax.block_until_ready(sparse_linear(x3, w3, b3))
    ref3 = _reference(x3, w3, b3)
    assert out3.shape == (192, 320)
    assert jnp.allclose(out3, ref3, atol=2e-3, rtol=2e-3), "mismatch vs reference (multi-K)"

    # Optional bf16-operand / f32-accumulate path (looser tolerance).
    out_bf = jax.block_until_ready(
        sparse_linear(x, weight, bias, compute_dtype=jnp.bfloat16))
    assert jnp.allclose(out_bf, ref, atol=5e-2, rtol=5e-2), "mismatch vs reference (bf16 compute)"

    print("KERNEL_OK")
</pallas_src>

<mosaic_0001>
module attributes {stable_mosaic.version = 11 : i64} {
  func.func @kernel(%arg0: i32, %arg1: i32, %arg2: memref<128x512xf32, #tpu.memory_space<vmem>>, %arg3: memref<256x512xf32, #tpu.memory_space<vmem>>, %arg4: memref<1x256xf32, #tpu.memory_space<vmem>>, %arg5: memref<128x256xf32, #tpu.memory_space<vmem>>) attributes {dimension_semantics = [#tpu.dimension_semantics<parallel>, #tpu.dimension_semantics<parallel>], iteration_bounds = array<i64: 2, 1>, scalar_prefetch = 0 : i64, scratch_operands = 0 : i64, tpu.core_type = #tpu.core_type<tc>, window_params = [{transform_indices = @transform_0, window_bounds = array<i64: 128, 512>}, {transform_indices = @transform_1, window_bounds = array<i64: 256, 512>}, {transform_indices = @transform_2, window_bounds = array<i64: 1, 256>}, {transform_indices = @transform_3, window_bounds = array<i64: 128, 256>}]} {
    %c0 = arith.constant 0 : index
    %c0_0 = arith.constant 0 : index
    %0 = vector.load %arg2[%c0, %c0_0] : memref<128x512xf32, #tpu.memory_space<vmem>>, vector<128x512xf32>
    %c0_1 = arith.constant 0 : index
    %c0_2 = arith.constant 0 : index
    %1 = vector.load %arg3[%c0_1, %c0_2] : memref<256x512xf32, #tpu.memory_space<vmem>>, vector<256x512xf32>
    %cst = arith.constant dense<0.000000e+00> : vector<128x256xf32>
    %2 = tpu.matmul %0, %1, %cst {dimension_numbers = #tpu.dot_dimension_numbers<[1], [1], [0], [0], [0, 0, 1, 0], [], []>} : vector<128x512xf32>, vector<256x512xf32>, vector<128x256xf32> -> vector<128x256xf32>
    %c0_3 = arith.constant 0 : index
    %c0_4 = arith.constant 0 : index
    %3 = vector.load %arg4[%c0_3, %c0_4] : memref<1x256xf32, #tpu.memory_space<vmem>>, vector<1x256xf32>
    %4 = vector.broadcast %3 : vector<1x256xf32> to vector<128x256xf32>
    %5 = arith.addf %2, %4 : vector<128x256xf32>
    %c0_5 = arith.constant 0 : index
    %c0_6 = arith.constant 0 : index
    %6 = vector.load %arg5[%c0_5, %c0_6] : memref<128x256xf32, #tpu.memory_space<vmem>>, vector<128x256xf32>
    tpu.vector_store %arg5[%c0_5, %c0_6], %5 {strides = array<i32>} : memref<128x256xf32, #tpu.memory_space<vmem>>, vector<128x256xf32>,
    return
  }
  func.func @transform_0(%arg0: i32, %arg1: i32) -> (i32, i32) {
    %c0_i32 = arith.constant 0 : i32
    %c0_i32_0 = arith.constant 0 : i32
    return %arg0, %c0_i32 : i32, i32
  }
  func.func @transform_1(%arg0: i32, %arg1: i32) -> (i32, i32) {
    %c0_i32 = arith.constant 0 : i32
    %c0_i32_0 = arith.constant 0 : i32
    return %arg1, %c0_i32 : i32, i32
  }
  func.func @transform_2(%arg0: i32, %arg1: i32) -> (i32, i32) {
    %c0_i32 = arith.constant 0 : i32
    %c0_i32_0 = arith.constant 0 : i32
    return %c0_i32, %arg1 : i32, i32
  }
  func.func @transform_3(%arg0: i32, %arg1: i32) -> (i32, i32) {
    %c0_i32 = arith.constant 0 : i32
    return %arg0, %arg1 : i32, i32
  }
}

</mosaic_0001>

<bundles_post_ra>
// kernel: sparse_linear.1
= control target key start
LH: loop header
LB: loop body
LE: loop exit
PB: predicated region body
PF: predicated region fallthrough
CT: control target
= control target key end

     0   :  { %8 = vsyncpa [#allocation3], 0  ;;  %s1766_s0 = inlined_call_operand.hbm [shape: f32[256,512], index: 0, kind: input, shape index: {}]   ;;  %s1767_s1 = inlined_call_operand.hbm [shape: f32[256,512], index: 1, kind: input, shape index: {}]   ;;  %s1768_s2 = inlined_call_operand.vmem [shape: f32[1,256], index: 2, kind: input, shape index: {}]   ;;  %s1769_s3 = inlined_call_operand.hbm [shape: f32[256,256], index: 3, kind: output, shape index: {}]  }
   0x1   :  { %10 = vsyncpa [#allocation3 + $0x1], 0 }
   0x2   :  { %11 = vsyncpa [#allocation6], 0 }
   0x3   :  { %12 = vsyncpa [#allocation4], 0 }
   0x4   :  { %14 = vsyncpa [#allocation4 + $0x1], 0  ;;  %s1400_s12 = smov 0   ;;  %s1402_s13 = smov 0  }
   0x5   :  { %s1404_s14 = smov 0   ;;  %s1406_s15 = smov 0  }
   0x6   :  { %s1408_s16 = smov 0   ;;  %s1410_s17 = smov 0  }
   0x7 LB: > { %s934_s18 = sadd.s32 4294967295, %s1371_s17   ;;  %s935_s19 = sadd.s32 4294967294, %s1371_s17   ;;  %s1371_s17 = sphi %s1410_s17, %s20_s17   ;;  %s1367_s16 = sphi %s1408_s16, %s1793_s16   ;;  %s1363_s15 = sphi %s1406_s15, %s1792_s15   ;;  %s1359_s14 = sphi %s1404_s14, %s1791_s14   ;;  %s1355_s13 = sphi %s1402_s13, %s1790_s13   ;;  %s1351_s12 = sphi %s1400_s12, %s1789_s12  }
   0x8   : > { %p52_p0 = scmp.ne.s32.totalorder %s1355_s13, %s1351_s12  ;;  %p1434_p1 = scmp.eq.s32.totalorder %s934_s18, 0 }
   0x9   : > { %p1438_p2 = scmp.eq.s32.totalorder %s934_s18, 1  ;;  %p136_p3 = scmp.eq.s32.totalorder %s935_s19, 1 }
   0xa   : > { %s1774_s20 = scalar_select %p1434_p1, 1, 0 }
   0xb   : > { %s1775_s21 = scalar_select %p1438_p2, 1, 0 }
   0xc   : > { %p1444_p4 = por %p1434_p1, %p52_p0  ;;  %p936_p5 = scmp.ge.s32.totalorder %s1371_s17, 1 }
   0xd   : > { %p1449_p6 = por %p136_p3, %p52_p0  ;;  %p143_p7 = scmp.lt.s32.totalorder %s1371_s17, 3 }
   0xe   : > { %s1776_s22 = scalar_select %p1444_p4, 1, 0 }
   0xf   : > { %s1777_s23 = scalar_select %p1449_p6, 1, 0 }
  0x10   : > { %p1454_p8 = pnand %p936_p5, %p143_p7  ;;  %s1373_s25 = smov [#allocation5]  }
  0x11   : > { %s159_s26 = sshll.u32 %s1373_s25, 4  ;;  %s32_s28 = sadd.s32 1, %s1367_s16  ;;  %s160_s26 = int_to_ptr.vmem [resolvable:$true] %s159_s26 }
  0x12   : > { %s1778_s24 = scalar_select %p1454_p8, 1, 0 }
  0x13   : > { %p1158_p9 = pneg %p1454_p8  ;;  %s1227_s4 = scalar_lea.hbm %s1767_s1, 16384 }
  0x14   : > { %p1228_p12 = scmp.ne.s32.totalorder %s1767_s1, %s1227_s4  ;;  %p1234_p5 = scmp.lt.u32.totalorder %s1227_s4, %s1767_s1 }
  0x15   : > { %p1463_p11 = pnand %p1158_p9, %p1434_p1 }
  0x17   : > { %p1229_p13 = pneg %p1463_p11 }
  0x19   : > { %p1230_p0 = pnand %p1229_p13, %p1228_p12 }
  0x1b   : > { %p1231_p3 = pneg %p1230_p0 }
  0x1d   : > { %p1236_p7 = pnand %p1234_p5, %p1231_p3 }
  0x1f   : > { %1239 = shalt.err (!%p1236_p7)
}
  0x20   : > { %s1240_s9 = scalar_lea.vmem %s160_s26, 16384  ;;  %p1248_p1 = scmp.lt.s32.totalorder %s160_s26, %s160_s26 }
  0x21   : > { %p1241_p9 = scmp.ne.s32.totalorder %s160_s26, %s1240_s9  ;;  %p1249_p4 = scmp.lt.s32.totalorder %s1240_s9, %s1240_s9 }
  0x23   : > { %p1243_p10 = pnand %p1241_p9, %p1229_p13  ;;  %p1250_p8 = por %p1249_p4, %p1248_p1 }
  0x25   : > { %p1244_p6 = pneg %p1243_p10 }
  0x27   : > { %p1251_p2 = pnand %p1250_p8, %p1244_p6 }
  0x29   : > { %1254 = shalt.err (!%p1251_p2)
}
  0x2a   : > { %s1374_s10 = smov 512   ;;  %s1375_s11 = smov 32  }
  0x2b   : > { %1161 = dma.hbm_to_vmem [thread:$0]  (!%p1463_p11), %s1767_s1, 16384, %s160_s26, [#allocation6], %s1374_s10, %s1374_s10, %s1375_s11  }
  0x2c   : > { %p34_p1 = scmp.ge.s32.totalorder %s32_s28, 2  ;;  %s39_s25 = sadd.s32 1, %s1359_s14 }
  0x2d   : > { %p46_p2 = scmp.ne.s32.totalorder %s1359_s14, %s1355_s13  ;;  %p47_p4 = scmp.eq.s32.totalorder %s1371_s17, 0 }
  0x2e   : > { %s1795_s28 = smov (%p34_p1, %s32_s28), 0  ;;  %p1781_p8 = scmp.ne.s32.totalorder %s1775_s21, 0 }
  0x2f   : > { %p1493_p6 = por %p47_p4, %p46_p2  ;;  %s36_s30 = ssub.s32 %s1367_s16, %s1795_s28 }
  0x30   : > { %p1499_p10 = por %p1781_p8, %p46_p2  ;;  %p1171_p12 = scmp.lt.s32.totalorder %s1371_s17, 2 }
  0x31   : > { %p37_p11 = scmp.eq.s32.totalorder %s36_s30, 0  ;;  %s181_s26 = sand.u32 1, %s1359_s14  }
  0x32   : > { %s940_s4 = sshll.u32 %s181_s26, 9  ;;  %s955_s6 = sshll.u32 %s1367_s16, 13 }
  0x33   : > { %s1508_s5 = scalar_select %p37_p11, %s1359_s14, %s39_s25  }
  0x34   : > { %s1514_s9 = scalar_lea.hbm %s1766_s0, %s955_s6  ;;  %s185_s21 = scalar_lea.vmem [#allocation2], %s940_s4 }
  0x35   : > { %s193_s18 = sshll.u32 %s185_s21, 4  ;;  %p1520_p13 = pnand %p1171_p12, %p1493_p6  ;;  %s1516_s18 = int_to_ptr.vmem [resolvable:$true] %s193_s18 }
  0x36   : > { %s1524_s25 = scalar_lea.sflag [#allocation3], %s181_s26  ;;  %s1255_s30 = scalar_lea.hbm %s1514_s9, 8192 }
  0x37   : > { %p1256_p0 = scmp.ne.s32.totalorder %s1514_s9, %s1255_s30  ;;  %p1257_p3 = pneg %p1520_p13 }
  0x38   : > { %s1260_s29 = scalar_lea.hbm %s1766_s0, 16384  ;;  %p1261_p9 = scmp.lt.u32.totalorder %s1514_s9, %s1766_s0 }
  0x39   : > { %p1258_p5 = pnand %p1257_p3, %p1256_p0  ;;  %p1262_p1 = scmp.lt.u32.totalorder %s1260_s29, %s1255_s30 }
  0x3a   : > { %p1264_p4 = scmp.lt.u32.totalorder %s1255_s30, %s1514_s9 }
  0x3b   : > { %p1259_p7 = pneg %p1258_p5  ;;  %p1263_p2 = por %p1262_p1, %p1261_p9 }
  0x3d   : > { %p1265_p6 = por %p1264_p4, %p1263_p2 }
  0x3f   : > { %p1266_p8 = pnand %p1265_p6, %p1259_p7 }
  0x41   : > { %1269 = shalt.err (!%p1266_p8)
}
  0x42   : > { %s1270_s26 = scalar_lea.vmem %s1516_s18, 8192  ;;  %s1376_s21 = smov [#allocation2]  }
  0x43   : > { %p1271_p12 = scmp.ne.s32.totalorder %s1516_s18, %s1270_s26  ;;  %s1275_s4 = sshll.u32 %s1376_s21, 4  ;;  %s1276_s4 = int_to_ptr.vmem [resolvable:$false] %s1275_s4 }
  0x44   : > { %s1277_s6 = scalar_lea.vmem %s1276_s4, 16384  ;;  %p1278_p5 = scmp.lt.s32.totalorder %s1516_s18, %s1276_s4 }
  0x45   : > { %p1273_p11 = pnand %p1271_p12, %p1257_p3  ;;  %p1279_p9 = scmp.lt.s32.totalorder %s1277_s6, %s1270_s26 }
  0x47   : > { %p1274_p0 = pneg %p1273_p11  ;;  %p1280_p1 = por %p1279_p9, %p1278_p5 }
  0x49   : > { %p1281_p2 = pnand %p1280_p1, %p1274_p0 }
  0x4b   : > { %1284 = shalt.err (!%p1281_p2)
}
  0x4c   : > { %1165 = dma.hbm_to_vmem [thread:$0]  (!%p1520_p13), %s1514_s9, 8192, %s1516_s18, %s1524_s25, %s1374_s10, %s1374_s10, %s1375_s11  }
  0x4d   : > { %p1784_p3 = scmp.ne.s32.totalorder %s1778_s24, 0 }
  0x4e   : > { %s1558_s30 = sand.u32 (!%p1784_p3), 1, %s1355_s13   ;;  %p1785_p7 = scmp.ne.s32.totalorder (!%p1784_p3), %s1776_s22, 0 }
  0x4f   : > { %205 = sbr.rel (%p1784_p3) target bundleno = 514 (0x202), region = 32  ;;  %s945_s29 = sshll.u32 (!%p1784_p3), %s1558_s30, 9 }
  0x50   : > { %s208_s7 = scalar_lea.sflag (!%p1784_p3), [#allocation3], %s1558_s30  ;;  %s1562_s8 = scalar_lea.vmem (!%p1784_p3), [#allocation2], %s945_s29 }
  0x56   : > { %1338 = dma.done.wait (%p1785_p7), %s208_s7, 8192  }
  0x57   : > { %1340 = vsyncadd (%p1785_p7), %s208_s7, 4294959104  ;;  %p1786_p13 = scmp.ne.s32.totalorder %s1774_s20, 0 }
  0x59   : > { %1342 = dma.done.wait (%p1786_p13), [#allocation6], 16384  }
  0x5a   : > { %1344 = vsyncadd (%p1786_p13), [#allocation6], 4294950912  ;;  %v316_v0 = vld [vmem:[#allocation5 + $0x8] sm:$0xff]  ;;  %v315_v2 = vld [vmem:[#allocation5] sm:$0xff]  ;;  %s947_s24 = sshll.u32 %s1558_s30, 8  ;;  %s957_s11 = sshll.u32 %s1363_s15, 12 }
  0x5b   : > { %v320_v1 = vld [vmem:[#allocation5 + $0x28] sm:$0xff]  ;;  %v319_v4 = vld [vmem:[#allocation5 + $0x20] sm:$0xff]  ;;  %v318_v5 = vld [vmem:[#allocation5 + $0x18] sm:$0xff]  ;;  %s1646_s10 = scalar_lea.vmem [#allocation7], %s947_s24  ;;  %s1713_s25 = scalar_lea.hbm %s1769_s3, %s957_s11 }
  0x5c   : > { %v958_v3 = vpack.c.bf16 %v320_v1, %v316_v0  ;;  %v322_v6 = vld [vmem:[#allocation5 + $0x38] sm:$0xff]  ;;  %v960_v7 = vpack.c.bf16 %v319_v4, %v315_v2  ;;  %v317_v9 = vld [vmem:[#allocation5 + $0x10] sm:$0xff]  ;;  %v324_v11 = vld [vmem:[#allocation5 + $0x48] sm:$0xff]  ;;  %s826_s9 = sshll.u32 %s1646_s10, 4  ;;  %s810_s15 = scalar_lea.sflag [#allocation4], %s1558_s30  ;;  %s1715_s9 = int_to_ptr.vmem [resolvable:$true] %s826_s9 }
  0x5d   : > { %v1022_v8 = vpack.c.bf16 %v322_v6, %v318_v5  ;;  %v321_v10 = vld [vmem:[#allocation5 + $0x30] sm:$0xff]  ;;  %v328_v13 = vld [vmem:[#allocation5 + $0x68] sm:$0xff]  ;;  %v326_v15 = vld [vmem:[#allocation5 + $0x58] sm:$0xff]  ;;  %s1285_s26 = scalar_lea.vmem %s1715_s9, 4096  ;;  %s1377_s21 = smov [#allocation7]  }
  0x5e   : > { %959 = vmatprep.subr.bf16.mxu1 %v958_v3  ;;  %v1024_v12 = vpack.c.bf16 %v321_v10, %v317_v9  ;;  %v962_v14 = vpack.c.bf16 %v328_v13, %v324_v11  ;;  %v330_v16 = vld [vmem:[#allocation5 + $0x78] sm:$0xff]  ;;  %v323_v17 = vld [vmem:[#allocation5 + $0x40] sm:$0xff]  ;;  %v325_v20 = vld [vmem:[#allocation5 + $0x50] sm:$0xff]  ;;  %p1286_p4 = scmp.ne.s32.totalorder %s1715_s9, %s1285_s26  ;;  %s1289_s4 = sshll.u32 %s1377_s21, 4  ;;  %s1290_s4 = int_to_ptr.vmem [resolvable:$false] %s1289_s4 }
  0x5f   : > { %961 = vmatpush1.bf16.xpose.msra.mxu1 %v960_v7  ;;  %1023 = vmatprep.subr.bf16.mxu0 %v1022_v8  ;;  %v327_v18 = vld [vmem:[#allocation5 + $0x60] sm:$0xff]  ;;  %v1026_v19 = vpack.c.bf16 %v330_v16, %v326_v15  ;;  %v329_v21 = vld [vmem:[#allocation5 + $0x70] sm:$0xff]  ;;  %v332_v22 = vld [vmem:[#allocation5 + $0x88] sm:$0xff]  ;;  %s1291_s6 = scalar_lea.vmem %s1290_s4, 8192  ;;  %p1292_p12 = scmp.lt.s32.totalorder %s1715_s9, %s1290_s4 }
  0x60   : > { %1025 = vmatpush1.bf16.xpose.msra.mxu0 %v1024_v12  ;;  %963 = vmatprep.subr.bf16.mxu1 %v962_v14  ;;  %v336_v23 = vld [vmem:[#allocation5 + $0xa8] sm:$0xff]  ;;  %v334_v24 = vld [vmem:[#allocation5 + $0x98] sm:$0xff]  ;;  %v964_v26 = vpack.c.bf16 %v327_v18, %v323_v17  ;;  %v1028_v27 = vpack.c.bf16 %v329_v21, %v325_v20  ;;  %v331_v30 = vld [vmem:[#allocation5 + $0x80] sm:$0xff]  ;;  %p1287_p6 = pnand %p1286_p4, %p1499_p10  ;;  %p1293_p11 = scmp.lt.s32.totalorder %s1291_s6, %s1285_s26 }
  0x61   : > { %1027 = vmatprep.subr.bf16.mxu0 %v1026_v19  ;;  %v338_v25 = vld [vmem:[#allocation5 + $0xb8] sm:$0xff]  ;;  %v966_v28 = vpack.c.bf16 %v336_v23, %v332_v22  ;;  %v335_v31 = vld [vmem:[#allocation5 + $0xa0] sm:$0xff]  ;;  %v333_v32 = vld [vmem:[#allocation5 + $0x90] sm:$0xff] }
  0x62   : > { %v1030_v29 = vpack.c.bf16 %v338_v25, %v334_v24  ;;  %v337_v33 = vld [vmem:[#allocation5 + $0xb0] sm:$0xff]  ;;  %v340_v34 = vld [vmem:[#allocation5 + $0xc8] sm:$0xff]  ;;  %v342_v36 = vld [vmem:[#allocation5 + $0xd8] sm:$0xff]  ;;  %v968_v38 = vpack.c.bf16 %v335_v31, %v331_v30  ;;  %p1288_p8 = pneg %p1287_p6  ;;  %p1294_p0 = por %p1293_p11, %p1292_p12 }
  0x63   : > { %v344_v35 = vld [vmem:[#allocation5 + $0xe8] sm:$0xff]  ;;  %v346_v37 = vld [vmem:[#allocation5 + $0xf8] sm:$0xff]  ;;  %v1032_v39 = vpack.c.bf16 %v337_v33, %v333_v32  ;;  %v339_v42 = vld [vmem:[#allocation5 + $0xc0] sm:$0xff] }
  0x64   : > { %v970_v40 = vpack.c.bf16 %v344_v35, %v340_v34  ;;  %v1034_v41 = vpack.c.bf16 %v346_v37, %v342_v36  ;;  %v343_v43 = vld [vmem:[#allocation5 + $0xe0] sm:$0xff]  ;;  %v341_v44 = vld [vmem:[#allocation5 + $0xd0] sm:$0xff]  ;;  %v348_v46 = vld [vmem:[#allocation5 + $0x108] sm:$0xff]  ;;  %p1295_p5 = pnand %p1294_p0, %p1288_p8 }
  0x65   : > { %v345_v45 = vld [vmem:[#allocation5 + $0xf0] sm:$0xff]  ;;  %v352_v47 = vld [vmem:[#allocation5 + $0x128] sm:$0xff]  ;;  %v350_v48 = vld [vmem:[#allocation5 + $0x118] sm:$0xff]  ;;  %v972_v50 = vpack.c.bf16 %v343_v43, %v339_v42 }
  0x66   : > { %v354_v49 = vld [vmem:[#allocation5 + $0x138] sm:$0xff]  ;;  %v1036_v51 = vpack.c.bf16 %v345_v45, %v341_v44  ;;  %v974_v52 = vpack.c.bf16 %v352_v47, %v348_v46  ;;  %v347_v54 = vld [vmem:[#allocation5 + $0x100] sm:$0xff]  ;;  %v349_v56 = vld [vmem:[#allocation5 + $0x110] sm:$0xff] }
  0x67   : > { %965 = vmatpush1.bf16.xpose.msra.mxu1 %v964_v26  ;;  %v1038_v53 = vpack.c.bf16 %v354_v49, %v350_v48  ;;  %v351_v55 = vld [vmem:[#allocation5 + $0x120] sm:$0xff]  ;;  %v353_v57 = vld [vmem:[#allocation5 + $0x130] sm:$0xff]  ;;  %v356_v58 = vld [vmem:[#allocation5 + $0x148] sm:$0xff] }
  0x68   : > { %1029 = vmatpush1.bf16.xpose.msra.mxu0 %v1028_v27  ;;  %967 = vmatprep.subr.bf16.mxu1 %v966_v28  ;;  %v360_v59 = vld [vmem:[#allocation5 + $0x168] sm:$0xff]  ;;  %v358_v60 = vld [vmem:[#allocation5 + $0x158] sm:$0xff]  ;;  %v976_v62 = vpack.c.bf16 %v351_v55, %v347_v54  ;;  %v1040_v63 = vpack.c.bf16 %v353_v57, %v349_v56  ;;  %v355_v2 = vld [vmem:[#allocation5 + $0x140] sm:$0xff] }
  0x69   : > { %1031 = vmatprep.subr.bf16.mxu0 %v1030_v29  ;;  %v362_v61 = vld [vmem:[#allocation5 + $0x178] sm:$0xff]  ;;  %v978_v0 = vpack.c.bf16 %v360_v59, %v356_v58  ;;  %v359_v3 = vld [vmem:[#allocation5 + $0x160] sm:$0xff]  ;;  %v357_v4 = vld [vmem:[#allocation5 + $0x150] sm:$0xff] }
  0x6a   : > { %v1042_v1 = vpack.c.bf16 %v362_v61, %v358_v60  ;;  %v361_v5 = vld [vmem:[#allocation5 + $0x170] sm:$0xff]  ;;  %v364_v6 = vld [vmem:[#allocation5 + $0x188] sm:$0xff]  ;;  %v366_v8 = vld [vmem:[#allocation5 + $0x198] sm:$0xff]  ;;  %v980_v10 = vpack.c.bf16 %v359_v3, %v355_v2 }
  0x6b   : > { %v368_v7 = vld [vmem:[#allocation5 + $0x1a8] sm:$0xff]  ;;  %v370_v9 = vld [vmem:[#allocation5 + $0x1b8] sm:$0xff]  ;;  %v1044_v11 = vpack.c.bf16 %v361_v5, %v357_v4  ;;  %v363_v16 = vld [vmem:[#allocation5 + $0x180] sm:$0xff] }
  0x6c   : > { %v982_v12 = vpack.c.bf16 %v368_v7, %v364_v6  ;;  %v1046_v13 = vpack.c.bf16 %v370_v9, %v366_v8  ;;  %v252_v14 = vld [vmem:[%s1562_s8 + $0x8] sm:$0xff]  ;;  %v254_v15 = vld [vmem:[%s1562_s8 + $0x18] sm:$0xff]  ;;  %v367_v17 = vld [vmem:[#allocation5 + $0x1a0] sm:$0xff] }
  0x6d   : > { %519 = vmatprep.mubr.f32.mxu1 %v252_v14  ;;  %680 = vmatprep.mubr.f32.mxu0 %v254_v15  ;;  %v365_v18 = vld [vmem:[#allocation5 + $0x190] sm:$0xff]  ;;  %v372_v20 = vld [vmem:[#allocation5 + $0x1c8] sm:$0xff]  ;;  %v374_v22 = vld [vmem:[#allocation5 + $0x1d8] sm:$0xff]  ;;  %v984_v24 = vpack.c.bf16 %v367_v17, %v363_v16 }
  0x6e   : > { %v369_v19 = vld [vmem:[#allocation5 + $0x1b0] sm:$0xff]  ;;  %v376_v21 = vld [vmem:[#allocation5 + $0x1e8] sm:$0xff]  ;;  %v378_v23 = vld [vmem:[#allocation5 + $0x1f8] sm:$0xff] }
  0x6f   : > { %969 = vmatpush1.bf16.xpose.msra.mxu1 %v968_v38  ;;  %v1048_v25 = vpack.c.bf16 %v369_v19, %v365_v18  ;;  %v986_v26 = vpack.c.bf16 %v376_v21, %v372_v20  ;;  %v1050_v27 = vpack.c.bf16 %v378_v23, %v374_v22  ;;  %v371_v28 = vld [vmem:[#allocation5 + $0x1c0] sm:$0xff]  ;;  %v373_v30 = vld [vmem:[#allocation5 + $0x1d0] sm:$0xff]  ;;  %v380_v32 = vld [vmem:[#allocation5 + $0x208] sm:$0xff] }
  0x70   : > { %1033 = vmatpush1.bf16.xpose.msra.mxu0 %v1032_v39  ;;  %971 = vmatprep.subr.bf16.mxu1 %v970_v40  ;;  %v375_v29 = vld [vmem:[#allocation5 + $0x1e0] sm:$0xff]  ;;  %v377_v31 = vld [vmem:[#allocation5 + $0x1f0] sm:$0xff]  ;;  %v384_v33 = vld [vmem:[#allocation5 + $0x228] sm:$0xff] }
  0x71   : > { %1035 = vmatprep.subr.bf16.mxu0 %v1034_v41  ;;  %v382_v34 = vld [vmem:[#allocation5 + $0x218] sm:$0xff]  ;;  %v988_v36 = vpack.c.bf16 %v375_v29, %v371_v28  ;;  %v1052_v37 = vpack.c.bf16 %v377_v31, %v373_v30  ;;  %v990_v38 = vpack.c.bf16 %v384_v33, %v380_v32  ;;  %v379_v40 = vld [vmem:[#allocation5 + $0x200] sm:$0xff]  ;;  %v381_v42 = vld [vmem:[#allocation5 + $0x210] sm:$0xff] }
  0x72   : > { %v386_v35 = vld [vmem:[#allocation5 + $0x238] sm:$0xff]  ;;  %v383_v41 = vld [vmem:[#allocation5 + $0x220] sm:$0xff]  ;;  %v385_v43 = vld [vmem:[#allocation5 + $0x230] sm:$0xff] }
  0x73   : > { %v1054_v39 = vpack.c.bf16 %v386_v35, %v382_v34  ;;  %v388_v44 = vld [vmem:[#allocation5 + $0x248] sm:$0xff]  ;;  %v390_v46 = vld [vmem:[#allocation5 + $0x258] sm:$0xff]  ;;  %v992_v48 = vpack.c.bf16 %v383_v41, %v379_v40  ;;  %v1056_v49 = vpack.c.bf16 %v385_v43, %v381_v42  ;;  %v389_v54 = vld [vmem:[#allocation5 + $0x250] sm:$0xff] }
  0x74   : > { %v392_v45 = vld [vmem:[#allocation5 + $0x268] sm:$0xff]  ;;  %v394_v47 = vld [vmem:[#allocation5 + $0x278] sm:$0xff]  ;;  %v393_v55 = vld [vmem:[#allocation5 + $0x270] sm:$0xff] }
  0x75   : > { %v396_v56 = vld [vmem:[#allocation5 + $0x288] sm:$0xff]  ;;  %v398_v58 = vld [vmem:[#allocation5 + $0x298] sm:$0xff]  ;;  %v1060_v61 = vpack.c.bf16 %v393_v55, %v389_v54  ;;  %v397_v2 = vld [vmem:[#allocation5 + $0x290] sm:$0xff] }
  0x76   : > { %v400_v57 = vld [vmem:[#allocation5 + $0x2a8] sm:$0xff]  ;;  %v402_v59 = vld [vmem:[#allocation5 + $0x2b8] sm:$0xff]  ;;  %v401_v3 = vld [vmem:[#allocation5 + $0x2b0] sm:$0xff] }
  0x77   : > { %973 = vmatpush1.bf16.xpose.msra.mxu1 %v972_v50  ;;  %v994_v50 = vpack.c.bf16 %v392_v45, %v388_v44  ;;  %v404_v4 = vld [vmem:[#allocation5 + $0x2c8] sm:$0xff]  ;;  %v406_v6 = vld [vmem:[#allocation5 + $0x2d8] sm:$0xff]  ;;  %v1064_v9 = vpack.c.bf16 %v401_v3, %v397_v2  ;;  %v405_v14 = vld [vmem:[#allocation5 + $0x2d0] sm:$0xff] }
  0x78   : > { %1037 = vmatpush1.bf16.xpose.msra.mxu0 %v1036_v51  ;;  %975 = vmatprep.subr.bf16.mxu1 %v974_v52  ;;  %v1058_v51 = vpack.c.bf16 %v394_v47, %v390_v46  ;;  %v387_v52 = vld [vmem:[#allocation5 + $0x240] sm:$0xff]  ;;  %v408_v5 = vld [vmem:[#allocation5 + $0x2e8] sm:$0xff]  ;;  %v410_v7 = vld [vmem:[#allocation5 + $0x2f8] sm:$0xff] }
  0x79   : > { %1039 = vmatprep.subr.bf16.mxu0 %v1038_v53  ;;  %v391_v53 = vld [vmem:[#allocation5 + $0x260] sm:$0xff]  ;;  %v409_v15 = vld [vmem:[#allocation5 + $0x2f0] sm:$0xff]  ;;  %v412_v16 = vld [vmem:[#allocation5 + $0x308] sm:$0xff] }
  0x7a   : > { %v996_v60 = vpack.c.bf16 %v391_v53, %v387_v52  ;;  %v416_v17 = vld [vmem:[#allocation5 + $0x328] sm:$0xff]  ;;  %v414_v18 = vld [vmem:[#allocation5 + $0x318] sm:$0xff]  ;;  %v1068_v21 = vpack.c.bf16 %v409_v15, %v405_v14  ;;  %v251_v2 = vld [vmem:[%s1562_s8] sm:$0xff] }
  0x7b   : > { %v418_v19 = vld [vmem:[#allocation5 + $0x338] sm:$0xff]  ;;  %v1006_v22 = vpack.c.bf16 %v416_v17, %v412_v16  ;;  %v420_v28 = vld [vmem:[#allocation5 + $0x348] sm:$0xff]  ;;  %v253_v3 = vld [vmem:[%s1562_s8 + $0x10] sm:$0xff] }
  0x7c   : > { %v1070_v23 = vpack.c.bf16 %v418_v19, %v414_v18  ;;  %v424_v29 = vld [vmem:[#allocation5 + $0x368] sm:$0xff]  ;;  %v422_v30 = vld [vmem:[#allocation5 + $0x358] sm:$0xff]  ;;  %v263_v14 = vld [vmem:[%s1562_s8 + $0x60] sm:$0xff] }
  0x7d   : > { %v426_v31 = vld [vmem:[#allocation5 + $0x378] sm:$0xff]  ;;  %v1010_v34 = vpack.c.bf16 %v424_v29, %v420_v28  ;;  %v428_v40 = vld [vmem:[#allocation5 + $0x388] sm:$0xff]  ;;  %v265_v15 = vld [vmem:[%s1562_s8 + $0x70] sm:$0xff] }
  0x7e   : > { %v1074_v35 = vpack.c.bf16 %v426_v31, %v422_v30  ;;  %v432_v41 = vld [vmem:[#allocation5 + $0x3a8] sm:$0xff]  ;;  %v430_v42 = vld [vmem:[#allocation5 + $0x398] sm:$0xff]  ;;  %v267_v18 = vld [vmem:[%s1562_s8 + $0x80] sm:$0xff] }
  0x7f   : > { %977 = vmatpush1.bf16.xpose.msra.mxu1 %v976_v62  ;;  %v998_v62 = vpack.c.bf16 %v400_v57, %v396_v56  ;;  %v434_v43 = vld [vmem:[#allocation5 + $0x3b8] sm:$0xff]  ;;  %v1014_v46 = vpack.c.bf16 %v432_v41, %v428_v40  ;;  %v436_v52 = vld [vmem:[#allocation5 + $0x3c8] sm:$0xff]  ;;  %v269_v19 = vld [vmem:[%s1562_s8 + $0x90] sm:$0xff] }
  0x80   : > { %1041 = vmatpush1.bf16.xpose.msra.mxu0 %v1040_v63  ;;  %979 = vmatprep.subr.bf16.mxu1 %v978_v0  ;;  %v1062_v63 = vpack.c.bf16 %v402_v59, %v398_v58  ;;  %v395_v0 = vld [vmem:[#allocation5 + $0x280] sm:$0xff]  ;;  %v1078_v47 = vpack.c.bf16 %v434_v43, %v430_v42  ;;  %v440_v53 = vld [vmem:[#allocation5 + $0x3e8] sm:$0xff]  ;;  %v438_v54 = vld [vmem:[#allocation5 + $0x3d8] sm:$0xff] }
  0x81   : > { %1043 = vmatprep.subr.bf16.mxu0 %v1042_v1  ;;  %v399_v1 = vld [vmem:[#allocation5 + $0x2a0] sm:$0xff]  ;;  %v442_v55 = vld [vmem:[#allocation5 + $0x3f8] sm:$0xff]  ;;  %v1018_v58 = vpack.c.bf16 %v440_v53, %v436_v52  ;;  %v268_v16 = vld [vmem:[%s1562_s8 + $0x88] sm:$0xff] }
  0x82   : > { %v1000_v8 = vpack.c.bf16 %v399_v1, %v395_v0  ;;  %v1082_v59 = vpack.c.bf16 %v442_v55, %v438_v54  ;;  %v270_v17 = vld [vmem:[%s1562_s8 + $0x98] sm:$0xff]  ;;  %v280_v28 = vld [vmem:[%s1562_s8 + $0xe8] sm:$0xff]  ;;  %v279_v30 = vld [vmem:[%s1562_s8 + $0xe0] sm:$0xff] }
  0x83   : > { %v282_v29 = vld [vmem:[%s1562_s8 + $0xf8] sm:$0xff]  ;;  %v281_v31 = vld [vmem:[%s1562_s8 + $0xf0] sm:$0xff]  ;;  %v292_v40 = vld [vmem:[%s1562_s8 + $0x148] sm:$0xff] }
  0x84   : > { %v294_v41 = vld [vmem:[%s1562_s8 + $0x158] sm:$0xff]  ;;  %v291_v42 = vld [vmem:[%s1562_s8 + $0x140] sm:$0xff]  ;;  %v293_v43 = vld [vmem:[%s1562_s8 + $0x150] sm:$0xff] }
  0x85   : > { %v304_v52 = vld [vmem:[%s1562_s8 + $0x1a8] sm:$0xff]  ;;  %v306_v53 = vld [vmem:[%s1562_s8 + $0x1b8] sm:$0xff]  ;;  %v303_v54 = vld [vmem:[%s1562_s8 + $0x1a0] sm:$0xff] }
  0x86   : > { %v305_v55 = vld [vmem:[%s1562_s8 + $0x1b0] sm:$0xff] }
  0x87   : > { %981 = vmatpush1.bf16.xpose.msra.mxu1 %v980_v10  ;;  %v1002_v10 = vpack.c.bf16 %v408_v5, %v404_v4  ;;  %v256_v4 = vld [vmem:[%s1562_s8 + $0x28] sm:$0xff]  ;;  %v258_v5 = vld [vmem:[%s1562_s8 + $0x38] sm:$0xff] }
  0x88   : > { %1045 = vmatpush1.bf16.xpose.msra.mxu0 %v1044_v11  ;;  %983 = vmatprep.subr.bf16.mxu1 %v982_v12  ;;  %v1066_v11 = vpack.c.bf16 %v410_v7, %v406_v6  ;;  %v403_v12 = vld [vmem:[#allocation5 + $0x2c0] sm:$0xff]  ;;  %v257_v7 = vld [vmem:[%s1562_s8 + $0x30] sm:$0xff] }
  0x89   : > { %1047 = vmatprep.subr.bf16.mxu0 %v1046_v13  ;;  %v407_v13 = vld [vmem:[#allocation5 + $0x2e0] sm:$0xff] }
  0x8a   : > { %v1004_v20 = vpack.c.bf16 %v407_v13, %v403_v12  ;;  %v255_v6 = vld [vmem:[%s1562_s8 + $0x20] sm:$0xff]  ;;  %v264_v12 = vld [vmem:[%s1562_s8 + $0x68] sm:$0xff]  ;;  %v266_v13 = vld [vmem:[%s1562_s8 + $0x78] sm:$0xff] }
  0x8f   : > { %985 = vmatpush1.bf16.xpose.msra.mxu1 %v984_v24  ;;  %v411_v24 = vld [vmem:[#allocation5 + $0x300] sm:$0xff] }
  0x90   : > { %1049 = vmatpush1.bf16.xpose.msra.mxu0 %v1048_v25  ;;  %987 = vmatprep.subr.bf16.mxu1 %v986_v26  ;;  %v415_v25 = vld [vmem:[#allocation5 + $0x320] sm:$0xff]  ;;  %v413_v26 = vld [vmem:[#allocation5 + $0x310] sm:$0xff] }
  0x91   : > { %1051 = vmatprep.subr.bf16.mxu0 %v1050_v27  ;;  %v417_v27 = vld [vmem:[#allocation5 + $0x330] sm:$0xff]  ;;  %v1008_v32 = vpack.c.bf16 %v415_v25, %v411_v24  ;;  %v276_v24 = vld [vmem:[%s1562_s8 + $0xc8] sm:$0xff]  ;;  %v278_v25 = vld [vmem:[%s1562_s8 + $0xd8] sm:$0xff] }
  0x92   : > { %v1072_v33 = vpack.c.bf16 %v417_v27, %v413_v26  ;;  %v275_v26 = vld [vmem:[%s1562_s8 + $0xc0] sm:$0xff]  ;;  %v277_v27 = vld [vmem:[%s1562_s8 + $0xd0] sm:$0xff] }
  0x97   : > { %989 = vmatpush1.bf16.xpose.msra.mxu1 %v988_v36  ;;  %v419_v36 = vld [vmem:[#allocation5 + $0x340] sm:$0xff] }
  0x98   : > { %1053 = vmatpush1.bf16.xpose.msra.mxu0 %v1052_v37  ;;  %991 = vmatprep.subr.bf16.mxu1 %v990_v38  ;;  %v423_v37 = vld [vmem:[#allocation5 + $0x360] sm:$0xff]  ;;  %v421_v38 = vld [vmem:[#allocation5 + $0x350] sm:$0xff] }
  0x99   : > { %1055 = vmatprep.subr.bf16.mxu0 %v1054_v39  ;;  %v425_v39 = vld [vmem:[#allocation5 + $0x370] sm:$0xff]  ;;  %v1012_v44 = vpack.c.bf16 %v423_v37, %v419_v36  ;;  %v288_v36 = vld [vmem:[%s1562_s8 + $0x128] sm:$0xff]  ;;  %v290_v37 = vld [vmem:[%s1562_s8 + $0x138] sm:$0xff] }
  0x9a   : > { %v1076_v45 = vpack.c.bf16 %v425_v39, %v421_v38  ;;  %v287_v38 = vld [vmem:[%s1562_s8 + $0x120] sm:$0xff]  ;;  %v289_v39 = vld [vmem:[%s1562_s8 + $0x130] sm:$0xff] }
  0x9f   : > { %993 = vmatpush1.bf16.xpose.msra.mxu1 %v992_v48  ;;  %v427_v48 = vld [vmem:[#allocation5 + $0x380] sm:$0xff] }
  0xa0   : > { %1057 = vmatpush1.bf16.xpose.msra.mxu0 %v1056_v49  ;;  %995 = vmatprep.subr.bf16.mxu1 %v994_v50  ;;  %v431_v49 = vld [vmem:[#allocation5 + $0x3a0] sm:$0xff]  ;;  %v429_v50 = vld [vmem:[#allocation5 + $0x390] sm:$0xff] }
  0xa1   : > { %1059 = vmatprep.subr.bf16.mxu0 %v1058_v51  ;;  %v433_v51 = vld [vmem:[#allocation5 + $0x3b0] sm:$0xff]  ;;  %v1016_v56 = vpack.c.bf16 %v431_v49, %v427_v48  ;;  %v300_v48 = vld [vmem:[%s1562_s8 + $0x188] sm:$0xff]  ;;  %v302_v49 = vld [vmem:[%s1562_s8 + $0x198] sm:$0xff] }
  0xa2   : > { %v1080_v57 = vpack.c.bf16 %v433_v51, %v429_v50  ;;  %v299_v50 = vld [vmem:[%s1562_s8 + $0x180] sm:$0xff]  ;;  %v301_v51 = vld [vmem:[%s1562_s8 + $0x190] sm:$0xff] }
  0xa7   : > { %997 = vmatpush1.bf16.xpose.msra.mxu1 %v996_v60  ;;  %v435_v60 = vld [vmem:[#allocation5 + $0x3c0] sm:$0xff] }
  0xa8   : > { %1061 = vmatpush1.bf16.xpose.msra.mxu0 %v1060_v61  ;;  %999 = vmatprep.subr.bf16.mxu1 %v998_v62  ;;  %v439_v61 = vld [vmem:[#allocation5 + $0x3e0] sm:$0xff]  ;;  %v437_v62 = vld [vmem:[#allocation5 + $0x3d0] sm:$0xff] }
  0xa9   : > { %1063 = vmatprep.subr.bf16.mxu0 %v1062_v63  ;;  %v441_v63 = vld [vmem:[#allocation5 + $0x3f0] sm:$0xff]  ;;  %v1020_v0 = vpack.c.bf16 %v439_v61, %v435_v60  ;;  %v312_v60 = vld [vmem:[%s1562_s8 + $0x1e8] sm:$0xff]  ;;  %v314_v61 = vld [vmem:[%s1562_s8 + $0x1f8] sm:$0xff] }
  0xaa   : > { %v1084_v1 = vpack.c.bf16 %v441_v63, %v437_v62  ;;  %v311_v62 = vld [vmem:[%s1562_s8 + $0x1e0] sm:$0xff]  ;;  %v313_v63 = vld [vmem:[%s1562_s8 + $0x1f0] sm:$0xff] }
  0xaf   : > { %1001 = vmatpush1.bf16.xpose.msra.mxu1 %v1000_v8  ;;  %v260_v8 = vld [vmem:[%s1562_s8 + $0x48] sm:$0xff] }
  0xb0   : > { %1065 = vmatpush1.bf16.xpose.msra.mxu0 %v1064_v9  ;;  %1003 = vmatprep.subr.bf16.mxu1 %v1002_v10  ;;  %v262_v9 = vld [vmem:[%s1562_s8 + $0x58] sm:$0xff]  ;;  %v259_v10 = vld [vmem:[%s1562_s8 + $0x40] sm:$0xff] }
  0xb1   : > { %1067 = vmatprep.subr.bf16.mxu0 %v1066_v11  ;;  %v261_v11 = vld [vmem:[%s1562_s8 + $0x50] sm:$0xff] }
  0xb7   : > { %1005 = vmatpush1.bf16.xpose.msra.mxu1 %v1004_v20  ;;  %v272_v20 = vld [vmem:[%s1562_s8 + $0xa8] sm:$0xff] }
  0xb8   : > { %1069 = vmatpush1.bf16.xpose.msra.mxu0 %v1068_v21  ;;  %1007 = vmatprep.subr.bf16.mxu1 %v1006_v22  ;;  %v274_v21 = vld [vmem:[%s1562_s8 + $0xb8] sm:$0xff]  ;;  %v271_v22 = vld [vmem:[%s1562_s8 + $0xa0] sm:$0xff] }
  0xb9   : > { %1071 = vmatprep.subr.bf16.mxu0 %v1070_v23  ;;  %v273_v23 = vld [vmem:[%s1562_s8 + $0xb0] sm:$0xff] }
  0xbf   : > { %1009 = vmatpush1.bf16.xpose.msra.mxu1 %v1008_v32  ;;  %v284_v32 = vld [vmem:[%s1562_s8 + $0x108] sm:$0xff] }
  0xc0   : > { %1073 = vmatpush1.bf16.xpose.msra.mxu0 %v1072_v33  ;;  %1011 = vmatprep.subr.bf16.mxu1 %v1010_v34  ;;  %v286_v33 = vld [vmem:[%s1562_s8 + $0x118] sm:$0xff]  ;;  %v283_v34 = vld [vmem:[%s1562_s8 + $0x100] sm:$0xff] }
  0xc1   : > { %1075 = vmatprep.subr.bf16.mxu0 %v1074_v35  ;;  %v285_v35 = vld [vmem:[%s1562_s8 + $0x110] sm:$0xff] }
  0xc7   : > { %1013 = vmatpush1.bf16.xpose.msra.mxu1 %v1012_v44  ;;  %v296_v44 = vld [vmem:[%s1562_s8 + $0x168] sm:$0xff] }
  0xc8   : > { %1077 = vmatpush1.bf16.xpose.msra.mxu0 %v1076_v45  ;;  %1015 = vmatprep.subr.bf16.mxu1 %v1014_v46  ;;  %v298_v45 = vld [vmem:[%s1562_s8 + $0x178] sm:$0xff]  ;;  %v295_v46 = vld [vmem:[%s1562_s8 + $0x160] sm:$0xff] }
  0xc9   : > { %1079 = vmatprep.subr.bf16.mxu0 %v1078_v47  ;;  %v297_v47 = vld [vmem:[%s1562_s8 + $0x170] sm:$0xff] }
  0xcf   : > { %1017 = vmatpush1.bf16.xpose.msra.mxu1 %v1016_v56  ;;  %v308_v56 = vld [vmem:[%s1562_s8 + $0x1c8] sm:$0xff] }
  0xd0   : > { %1081 = vmatpush1.bf16.xpose.msra.mxu0 %v1080_v57  ;;  %1019 = vmatprep.subr.bf16.mxu1 %v1018_v58  ;;  %v310_v57 = vld [vmem:[%s1562_s8 + $0x1d8] sm:$0xff]  ;;  %v307_v58 = vld [vmem:[%s1562_s8 + $0x1c0] sm:$0xff] }
  0xd1   : > { %1083 = vmatprep.subr.bf16.mxu0 %v1082_v59  ;;  %v309_v59 = vld [vmem:[%s1562_s8 + $0x1d0] sm:$0xff] }
  0xd7   : > { %1021 = vmatpush1.bf16.xpose.msra.mxu1 %v1020_v0  ;;  %v445_v0 = vlaneseq }
  0xd8   : > { %1085 = vmatpush1.bf16.xpose.msra.mxu0 %v1084_v1 }
  0xd9   : > { %v446_v1 = vshrl.u32 %v445_v0, 7 }
  0xde   : > { %520 = vmatmul.mubr.f32.vlgmr.msra.gmra.mrb[0].mxu1 %v251_v2  ;;  %v447_v2 = vsub.s32 0, %v446_v1 }
  0xdf   : > { %681 = vmatmul.mubr.f32.vlgmr.msra.gmra.mrb[0].mxu0 %v253_v3  ;;  %525 = vmatprep.mubr.f32.mxu1 %v256_v4  ;;  %v443_v3 = vld [vmem:[%s1768_s2] sm:$0x3]  ;;  %v451_v4 = vsub.s32 1, %v446_v1 }
  0xe0   : > { %686 = vmatprep.mubr.f32.mxu0 %v258_v5  ;;  %v1639_v5 = vrot.slane %v443_v3, %v447_v2 }
  0xe2   : > { %526 = vmatmul.mubr.f32.gmra.mrb[2].mxu1 %v255_v6  ;;  %v1641_v6 = vrot.slane %v443_v3, %v451_v4 }
  0xe3   : > { %687 = vmatmul.mubr.f32.gmra.mrb[2].mxu0 %v257_v7  ;;  %531 = vmatprep.mubr.f32.mxu1 %v260_v8 }
  0xe4   : > { %692 = vmatprep.mubr.f32.mxu0 %v262_v9 }
  0xe6   : > { %532 = vmatmul.mubr.f32.gmra.mrb[4].mxu1 %v259_v10 }
  0xe7   : > { %693 = vmatmul.mubr.f32.gmra.mrb[4].mxu0 %v261_v11  ;;  %537 = vmatprep.mubr.f32.mxu1 %v264_v12 }
  0xe8   : > { %698 = vmatprep.mubr.f32.mxu0 %v266_v13 }
  0xea   : > { %538 = vmatmul.mubr.f32.gmra.mrb[6].mxu1 %v263_v14 }
  0xeb   : > { %699 = vmatmul.mubr.f32.gmra.mrb[6].mxu0 %v265_v15  ;;  %543 = vmatprep.mubr.f32.mxu1 %v268_v16 }
  0xec   : > { %704 = vmatprep.mubr.f32.mxu0 %v270_v17 }
  0xee   : > { %544 = vmatmul.mubr.f32.gmra.mrb[8].mxu1 %v267_v18 }
  0xef   : > { %705 = vmatmul.mubr.f32.gmra.mrb[8].mxu0 %v269_v19  ;;  %549 = vmatprep.mubr.f32.mxu1 %v272_v20 }
  0xf0   : > { %710 = vmatprep.mubr.f32.mxu0 %v274_v21 }
  0xf2   : > { %550 = vmatmul.mubr.f32.gmra.mrb[10].mxu1 %v271_v22 }
  0xf3   : > { %711 = vmatmul.mubr.f32.gmra.mrb[10].mxu0 %v273_v23  ;;  %555 = vmatprep.mubr.f32.mxu1 %v276_v24 }
  0xf4   : > { %716 = vmatprep.mubr.f32.mxu0 %v278_v25 }
  0xf6   : > { %556 = vmatmul.mubr.f32.gmra.mrb[12].mxu1 %v275_v26 }
  0xf7   : > { %717 = vmatmul.mubr.f32.gmra.mrb[12].mxu0 %v277_v27  ;;  %561 = vmatprep.mubr.f32.mxu1 %v280_v28 }
  0xf8   : > { %722 = vmatprep.mubr.f32.mxu0 %v282_v29 }
  0xfa   : > { %562 = vmatmul.mubr.f32.gmra.mrb[14].mxu1 %v279_v30 }
  0xfb   : > { %723 = vmatmul.mubr.f32.gmra.mrb[14].mxu0 %v281_v31  ;;  %567 = vmatprep.mubr.f32.mxu1 %v284_v32 }
  0xfc   : > { %728 = vmatprep.mubr.f32.mxu0 %v286_v33 }
  0xfe   : > { %568 = vmatmul.mubr.f32.gmra.mrb[16].mxu1 %v283_v34 }
  0xff   : > { %729 = vmatmul.mubr.f32.gmra.mrb[16].mxu0 %v285_v35  ;;  %573 = vmatprep.mubr.f32.mxu1 %v288_v36 }
 0x100   : > { %734 = vmatprep.mubr.f32.mxu0 %v290_v37 }
 0x102   : > { %574 = vmatmul.mubr.f32.gmra.mrb[18].mxu1 %v287_v38 }
 0x103   : > { %735 = vmatmul.mubr.f32.gmra.mrb[18].mxu0 %v289_v39  ;;  %579 = vmatprep.mubr.f32.mxu1 %v292_v40 }
 0x104   : > { %740 = vmatprep.mubr.f32.mxu0 %v294_v41 }
 0x106   : > { %580 = vmatmul.mubr.f32.gmra.mrb[20].mxu1 %v291_v42 }
 0x107   : > { %741 = vmatmul.mubr.f32.gmra.mrb[20].mxu0 %v293_v43  ;;  %585 = vmatprep.mubr.f32.mxu1 %v296_v44 }
 0x108   : > { %746 = vmatprep.mubr.f32.mxu0 %v298_v45 }
 0x10a   : > { %586 = vmatmul.mubr.f32.gmra.mrb[22].mxu1 %v295_v46 }
 0x10b   : > { %747 = vmatmul.mubr.f32.gmra.mrb[22].mxu0 %v297_v47  ;;  %591 = vmatprep.mubr.f32.mxu1 %v300_v48 }
 0x10c   : > { %752 = vmatprep.mubr.f32.mxu0 %v302_v49 }
 0x10e   : > { %592 = vmatmul.mubr.f32.gmra.mrb[24].mxu1 %v299_v50 }
 0x10f   : > { %753 = vmatmul.mubr.f32.gmra.mrb[24].mxu0 %v301_v51  ;;  %597 = vmatprep.mubr.f32.mxu1 %v304_v52 }
 0x110   : > { %758 = vmatprep.mubr.f32.mxu0 %v306_v53 }
 0x112   : > { %598 = vmatmul.mubr.f32.gmra.mrb[26].mxu1 %v303_v54 }
 0x113   : > { %759 = vmatmul.mubr.f32.gmra.mrb[26].mxu0 %v305_v55  ;;  %603 = vmatprep.mubr.f32.mxu1 %v308_v56 }
 0x114   : > { %764 = vmatprep.mubr.f32.mxu0 %v310_v57 }
 0x116   : > { %604 = vmatmul.mubr.f32.gmra.mrb[28].mxu1 %v307_v58 }
 0x117   : > { %765 = vmatmul.mubr.f32.gmra.mrb[28].mxu0 %v309_v59  ;;  %609 = vmatprep.mubr.f32.mxu1 %v312_v60 }
 0x118   : > { %770 = vmatprep.mubr.f32.mxu0 %v314_v61 }
 0x11a   : > { %610 = vmatmul.mubr.f32.gmra.mrb[30].mxu1 %v311_v62 }
 0x11b   : > { %771 = vmatmul.mubr.f32.gmra.mrb[30].mxu0 %v313_v63 }
 0x1b1   : > { %v521_v7 = vpop.f32.mrb[0].mxu1 }
 0x1b2   : > { %v522_v8 = vadd.f32 %v521_v7, %v1639_v5  ;;  %v523_v9 = vpop.f32.mrb[1].mxu1  ;;  %v682_v10 = vpop.f32.mrb[0].mxu0 }
 0x1b3   : > { %v524_v11 = vadd.f32 %v523_v9, %v1641_v6  ;;  %v684_v12 = vpop.f32.mrb[1].mxu0 }
 0x1b4   : > { %v683_v13 = vadd.f32 %v682_v10, %v522_v8 }
 0x1b5   : > { %v685_v14 = vadd.f32 %v684_v12, %v524_v11  ;;  %v527_v15 = vpop.f32.mrb[2].mxu1 }
 0x1b6   : > { %777 = vst [vmem:[%s1646_s10] sm:$0xff] %v683_v13  ;;  %v528_v16 = vadd.f32 %v527_v15, %v1639_v5  ;;  %v529_v17 = vpop.f32.mrb[3].mxu1  ;;  %v688_v18 = vpop.f32.mrb[2].mxu0 }
 0x1b7   : > { %778 = vst [vmem:[%s1646_s10 + $0x8] sm:$0xff] %v685_v14  ;;  %v530_v19 = vadd.f32 %v529_v17, %v1641_v6  ;;  %v690_v20 = vpop.f32.mrb[3].mxu0 }
 0x1b8   : > { %v689_v21 = vadd.f32 %v688_v18, %v528_v16 }
 0x1b9   : > { %v691_v22 = vadd.f32 %v690_v20, %v530_v19  ;;  %v533_v23 = vpop.f32.mrb[4].mxu1 }
 0x1ba   : > { %779 = vst [vmem:[%s1646_s10 + $0x10] sm:$0xff] %v689_v21  ;;  %v534_v24 = vadd.f32 %v533_v23, %v1639_v5  ;;  %v535_v25 = vpop.f32.mrb[5].mxu1  ;;  %v694_v26 = vpop.f32.mrb[4].mxu0 }
 0x1bb   : > { %780 = vst [vmem:[%s1646_s10 + $0x18] sm:$0xff] %v691_v22  ;;  %v536_v27 = vadd.f32 %v535_v25, %v1641_v6  ;;  %v696_v28 = vpop.f32.mrb[5].mxu0 }
 0x1bc   : > { %v695_v29 = vadd.f32 %v694_v26, %v534_v24 }
 0x1bd   : > { %v697_v30 = vadd.f32 %v696_v28, %v536_v27  ;;  %v539_v31 = vpop.f32.mrb[6].mxu1 }
 0x1be   : > { %781 = vst [vmem:[%s1646_s10 + $0x20] sm:$0xff] %v695_v29  ;;  %v540_v32 = vadd.f32 %v539_v31, %v1639_v5  ;;  %v541_v33 = vpop.f32.mrb[7].mxu1  ;;  %v700_v34 = vpop.f32.mrb[6].mxu0 }
 0x1bf   : > { %782 = vst [vmem:[%s1646_s10 + $0x28] sm:$0xff] %v697_v30  ;;  %v542_v35 = vadd.f32 %v541_v33, %v1641_v6  ;;  %v702_v36 = vpop.f32.mrb[7].mxu0 }
 0x1c0   : > { %v701_v37 = vadd.f32 %v700_v34, %v540_v32 }
 0x1c1   : > { %v703_v38 = vadd.f32 %v702_v36, %v542_v35  ;;  %v545_v39 = vpop.f32.mrb[8].mxu1 }
 0x1c2   : > { %783 = vst [vmem:[%s1646_s10 + $0x30] sm:$0xff] %v701_v37  ;;  %v546_v40 = vadd.f32 %v545_v39, %v1639_v5  ;;  %v547_v41 = vpop.f32.mrb[9].mxu1  ;;  %v706_v42 = vpop.f32.mrb[8].mxu0 }
 0x1c3   : > { %784 = vst [vmem:[%s1646_s10 + $0x38] sm:$0xff] %v703_v38  ;;  %v548_v43 = vadd.f32 %v547_v41, %v1641_v6  ;;  %v708_v44 = vpop.f32.mrb[9].mxu0 }
 0x1c4   : > { %v707_v45 = vadd.f32 %v706_v42, %v546_v40 }
 0x1c5   : > { %v709_v46 = vadd.f32 %v708_v44, %v548_v43  ;;  %v551_v47 = vpop.f32.mrb[10].mxu1 }
 0x1c6   : > { %785 = vst [vmem:[%s1646_s10 + $0x40] sm:$0xff] %v707_v45  ;;  %v552_v48 = vadd.f32 %v551_v47, %v1639_v5  ;;  %v553_v49 = vpop.f32.mrb[11].mxu1  ;;  %v712_v50 = vpop.f32.mrb[10].mxu0 }
 0x1c7   : > { %786 = vst [vmem:[%s1646_s10 + $0x48] sm:$0xff] %v709_v46  ;;  %v554_v51 = vadd.f32 %v553_v49, %v1641_v6  ;;  %v714_v52 = vpop.f32.mrb[11].mxu0 }
 0x1c8   : > { %v713_v53 = vadd.f32 %v712_v50, %v552_v48 }
 0x1c9   : > { %v715_v54 = vadd.f32 %v714_v52, %v554_v51  ;;  %v557_v55 = vpop.f32.mrb[12].mxu1 }
 0x1ca   : > { %787 = vst [vmem:[%s1646_s10 + $0x50] sm:$0xff] %v713_v53  ;;  %v558_v56 = vadd.f32 %v557_v55, %v1639_v5  ;;  %v559_v57 = vpop.f32.mrb[13].mxu1  ;;  %v718_v58 = vpop.f32.mrb[12].mxu0 }
 0x1cb   : > { %788 = vst [vmem:[%s1646_s10 + $0x58] sm:$0xff] %v715_v54  ;;  %v560_v59 = vadd.f32 %v559_v57, %v1641_v6  ;;  %v720_v60 = vpop.f32.mrb[13].mxu0 }
 0x1cc   : > { %v719_v61 = vadd.f32 %v718_v58, %v558_v56 }
 0x1cd   : > { %v721_v62 = vadd.f32 %v720_v60, %v560_v59  ;;  %v563_v63 = vpop.f32.mrb[14].mxu1 }
 0x1ce   : > { %789 = vst [vmem:[%s1646_s10 + $0x60] sm:$0xff] %v719_v61  ;;  %v564_v0 = vadd.f32 %v563_v63, %v1639_v5  ;;  %v565_v1 = vpop.f32.mrb[15].mxu1  ;;  %v724_v2 = vpop.f32.mrb[14].mxu0 }
 0x1cf   : > { %790 = vst [vmem:[%s1646_s10 + $0x68] sm:$0xff] %v721_v62  ;;  %v566_v3 = vadd.f32 %v565_v1, %v1641_v6  ;;  %v726_v4 = vpop.f32.mrb[15].mxu0 }
 0x1d0   : > { %v725_v7 = vadd.f32 %v724_v2, %v564_v0 }
 0x1d1   : > { %v727_v8 = vadd.f32 %v726_v4, %v566_v3  ;;  %v569_v9 = vpop.f32.mrb[16].mxu1 }
 0x1d2   : > { %791 = vst [vmem:[%s1646_s10 + $0x70] sm:$0xff] %v725_v7  ;;  %v570_v10 = vadd.f32 %v569_v9, %v1639_v5  ;;  %v571_v11 = vpop.f32.mrb[17].mxu1  ;;  %v730_v12 = vpop.f32.mrb[16].mxu0 }
 0x1d3   : > { %792 = vst [vmem:[%s1646_s10 + $0x78] sm:$0xff] %v727_v8  ;;  %v572_v13 = vadd.f32 %v571_v11, %v1641_v6  ;;  %v732_v14 = vpop.f32.mrb[17].mxu0 }
 0x1d4   : > { %v731_v15 = vadd.f32 %v730_v12, %v570_v10 }
 0x1d5   : > { %v733_v16 = vadd.f32 %v732_v14, %v572_v13  ;;  %v575_v17 = vpop.f32.mrb[18].mxu1 }
 0x1d6   : > { %793 = vst [vmem:[%s1646_s10 + $0x80] sm:$0xff] %v731_v15  ;;  %v576_v18 = vadd.f32 %v575_v17, %v1639_v5  ;;  %v577_v19 = vpop.f32.mrb[19].mxu1  ;;  %v736_v20 = vpop.f32.mrb[18].mxu0 }
 0x1d7   : > { %794 = vst [vmem:[%s1646_s10 + $0x88] sm:$0xff] %v733_v16  ;;  %v578_v21 = vadd.f32 %v577_v19, %v1641_v6  ;;  %v738_v22 = vpop.f32.mrb[19].mxu0 }
 0x1d8   : > { %v737_v23 = vadd.f32 %v736_v20, %v576_v18 }
 0x1d9   : > { %v739_v24 = vadd.f32 %v738_v22, %v578_v21  ;;  %v581_v25 = vpop.f32.mrb[20].mxu1 }
 0x1da   : > { %795 = vst [vmem:[%s1646_s10 + $0x90] sm:$0xff] %v737_v23  ;;  %v582_v26 = vadd.f32 %v581_v25, %v1639_v5  ;;  %v583_v27 = vpop.f32.mrb[21].mxu1  ;;  %v742_v28 = vpop.f32.mrb[20].mxu0 }
 0x1db   : > { %796 = vst [vmem:[%s1646_s10 + $0x98] sm:$0xff] %v739_v24  ;;  %v584_v29 = vadd.f32 %v583_v27, %v1641_v6  ;;  %v744_v30 = vpop.f32.mrb[21].mxu0 }
 0x1dc   : > { %v743_v31 = vadd.f32 %v742_v28, %v582_v26 }
 0x1dd   : > { %v745_v32 = vadd.f32 %v744_v30, %v584_v29  ;;  %v587_v33 = vpop.f32.mrb[22].mxu1 }
 0x1de   : > { %797 = vst [vmem:[%s1646_s10 + $0xa0] sm:$0xff] %v743_v31  ;;  %v588_v34 = vadd.f32 %v587_v33, %v1639_v5  ;;  %v589_v35 = vpop.f32.mrb[23].mxu1  ;;  %v748_v36 = vpop.f32.mrb[22].mxu0 }
 0x1df   : > { %798 = vst [vmem:[%s1646_s10 + $0xa8] sm:$0xff] %v745_v32  ;;  %v590_v37 = vadd.f32 %v589_v35, %v1641_v6  ;;  %v750_v38 = vpop.f32.mrb[23].mxu0 }
 0x1e0   : > { %v749_v39 = vadd.f32 %v748_v36, %v588_v34 }
 0x1e1   : > { %v751_v40 = vadd.f32 %v750_v38, %v590_v37  ;;  %v593_v41 = vpop.f32.mrb[24].mxu1 }
 0x1e2   : > { %799 = vst [vmem:[%s1646_s10 + $0xb0] sm:$0xff] %v749_v39  ;;  %v594_v42 = vadd.f32 %v593_v41, %v1639_v5  ;;  %v595_v43 = vpop.f32.mrb[25].mxu1  ;;  %v754_v44 = vpop.f32.mrb[24].mxu0 }
 0x1e3   : > { %800 = vst [vmem:[%s1646_s10 + $0xb8] sm:$0xff] %v751_v40  ;;  %v596_v45 = vadd.f32 %v595_v43, %v1641_v6  ;;  %v756_v46 = vpop.f32.mrb[25].mxu0 }
 0x1e4   : > { %v755_v47 = vadd.f32 %v754_v44, %v594_v42 }
 0x1e5   : > { %v757_v48 = vadd.f32 %v756_v46, %v596_v45  ;;  %v599_v49 = vpop.f32.mrb[26].mxu1 }
 0x1e6   : > { %801 = vst [vmem:[%s1646_s10 + $0xc0] sm:$0xff] %v755_v47  ;;  %v600_v50 = vadd.f32 %v599_v49, %v1639_v5  ;;  %v601_v51 = vpop.f32.mrb[27].mxu1  ;;  %v760_v52 = vpop.f32.mrb[26].mxu0 }
 0x1e7   : > { %802 = vst [vmem:[%s1646_s10 + $0xc8] sm:$0xff] %v757_v48  ;;  %v602_v53 = vadd.f32 %v601_v51, %v1641_v6  ;;  %v762_v54 = vpop.f32.mrb[27].mxu0 }
 0x1e8   : > { %v761_v55 = vadd.f32 %v760_v52, %v600_v50 }
 0x1e9   : > { %v763_v56 = vadd.f32 %v762_v54, %v602_v53  ;;  %v605_v57 = vpop.f32.mrb[28].mxu1 }
 0x1ea   : > { %803 = vst [vmem:[%s1646_s10 + $0xd0] sm:$0xff] %v761_v55  ;;  %v606_v58 = vadd.f32 %v605_v57, %v1639_v5  ;;  %v607_v59 = vpop.f32.mrb[29].mxu1  ;;  %v766_v60 = vpop.f32.mrb[28].mxu0 }
 0x1eb   : > { %804 = vst [vmem:[%s1646_s10 + $0xd8] sm:$0xff] %v763_v56  ;;  %v608_v61 = vadd.f32 %v607_v59, %v1641_v6  ;;  %v768_v62 = vpop.f32.mrb[29].mxu0 }
 0x1ec   : > { %v767_v63 = vadd.f32 %v766_v60, %v606_v58 }
 0x1ed   : > { %v769_v0 = vadd.f32 %v768_v62, %v608_v61  ;;  %v611_v1 = vpop.f32.mrb[30].mxu1 }
 0x1ee   : > { %805 = vst [vmem:[%s1646_s10 + $0xe0] sm:$0xff] %v767_v63  ;;  %v612_v2 = vadd.f32 %v611_v1, %v1639_v5  ;;  %v613_v3 = vpop.f32.mrb[31].mxu1  ;;  %v772_v4 = vpop.f32.mrb[30].mxu0 }
 0x1ef   : > { %806 = vst [vmem:[%s1646_s10 + $0xe8] sm:$0xff] %v769_v0  ;;  %v614_v7 = vadd.f32 %v613_v3, %v1641_v6  ;;  %v774_v8 = vpop.f32.mrb[31].mxu0 }
 0x1f0   : > { %v773_v9 = vadd.f32 %v772_v4, %v612_v2 }
 0x1f1   : > { %v775_v10 = vadd.f32 %v774_v8, %v614_v7 }
 0x1f2   : > { %807 = vst [vmem:[%s1646_s10 + $0xf0] sm:$0xff] %v773_v9 }
 0x1f3   : > { %808 = vst [vmem:[%s1646_s10 + $0xf8] sm:$0xff] %v775_v10 }
 0x1f4   : > { %1298 = shalt.err (!%p1295_p5)
}
 0x1f5   : > { %s1299_s29 = scalar_lea.hbm %s1713_s25, 4096  ;;  %s1303_s20 = scalar_lea.hbm %s1769_s3, 8192 }
 0x1f6   : > { %p1300_p9 = scmp.ne.s32.totalorder %s1713_s25, %s1299_s29  ;;  %p1304_p3 = scmp.lt.u32.totalorder %s1713_s25, %s1769_s3 }
 0x1f7   : > { %p1305_p7 = scmp.lt.u32.totalorder %s1303_s20, %s1299_s29  ;;  %p1307_p4 = scmp.lt.u32.totalorder %s1299_s29, %s1713_s25 }
 0x1f8   : > { %p1301_p1 = pnand %p1300_p9, %p1499_p10 }
 0x1f9   : > { %p1306_p13 = por %p1305_p7, %p1304_p3 }
 0x1fa   : > { %p1302_p2 = pneg %p1301_p1 }
 0x1fb   : > { %p1308_p6 = por %p1307_p4, %p1306_p13 }
 0x1fd   : > { %p1309_p8 = pnand %p1308_p6, %p1302_p2 }
 0x1ff   : > { %1312 = shalt.err (!%p1309_p8)
}
 0x200   : > { %s1378_s10 = smov 256   ;;  %s1379_s11 = smov 16  }
 0x201   : > { %1156 = dma.vmem_to_hbm [thread:$0]  (%p1499_p10), %s1715_s9, 4096, %s1713_s25, %s810_s15, %s1378_s10, %s1378_s10, %s1379_s11  }
 0x202 PF: > { %s841_s18 = sand.u32 1, %s1351_s12   ;;  %p1787_p12 = scmp.ne.s32.totalorder %s1777_s23, 0 }
 0x203   : > { %p1788_p11 = scmp.ge.s32.totalorder %s1371_s17, 2  ;;  %s842_s19 = scalar_lea.sflag [#allocation4], %s841_s18 }
 0x205   : > { %p1167_p0 = pnand %p1788_p11, %p1787_p12 }
 0x207   : > { %1346 = dma.done.wait (!%p1167_p0), %s842_s19, 4096  }
 0x208   : > { %1348 = vsyncadd (!%p1167_p0), %s842_s19, 4294963200  ;;  %s20_s17 = sadd.s32 1, %s1371_s17   ;;  %s1789_s12 = smov %s1355_s13 }
 0x209   : > { %p17_p5 = scmp.ge.s32.totalorder %s20_s17, 4   ;;  %s1790_s13 = smov %s1359_s14 }
 0x20a   : > { %s1791_s14 = smov %s1508_s5  ;;  %s1792_s15 = smov %s1367_s16 }
 0x20b   : > { %s1793_s16 = smov %s1795_s28  ;;  %19 = sbr.rel (!%p17_p5) target bundleno = 7 (0x7), region = 85 }
 0x212   :  { %847 = vsyncpa [#allocation3], 1 }
 0x213   :  { %849 = vsyncpa [#allocation3 + $0x1], 1 }
 0x214   :  { %850 = vsyncpa [#allocation6], 1 }
 0x215   :  { %851 = vsyncpa [#allocation4], 1 }
 0x216   :  { %853 = vsyncpa [#allocation4 + $0x1], 1 }

</bundles_post_ra>
